<compile_context>
chip_gen: v5e
topology: v5e:2x2
jax: 0.10.0
libtpu: 0.0.40
codegen_flags: <defaults>
</compile_context>

<pallas_src>
import functools

import jax
import jax.numpy as jnp
from jax.experimental import pallas as pl
from jax.experimental.pallas import tpu as pltpu


def _linear_pool_kernel(x_ref, w_ref, o_ref):
    # x_ref: (tB, C, tL) VMEM tile in the input's native dtype
    # w_ref: (1, C) f32 in SMEM (read as scalars, trace-time unrolled)
    # o_ref: (tB, tL) VMEM tile
    C = x_ref.shape[1]
    # Unrolled per-channel MAC on the VPU, accumulating in f32.
    acc = x_ref[:, 0, :].astype(jnp.float32) * w_ref[0, 0]
    for c in range(1, C):
        acc = acc + x_ref[:, c, :].astype(jnp.float32) * w_ref[0, c]
    o_ref[...] = acc.astype(o_ref.dtype)


def _choose_tiles(B, C, L, itemsize, budget_bytes, max_block_l):
    """Pick (tB, tL) so double-buffered in+out blocks stay within budget_bytes."""
    # Batch tile: full B when small; otherwise a multiple of 8 (sublane-aligned
    # output block). Partial trailing blocks are masked/padded by Pallas.
    tB = B if B <= 8 else 8
    # Bytes per L element: double-buffered input (tB*C) + output (tB), with a
    # conservative >=4B element size to also cover in-kernel f32 temporaries.
    per_l = 2 * tB * (C + 1) * max(itemsize, 4)
    tL = (budget_bytes // per_l) // 128 * 128
    tL = int(max(128, min(tL, max_block_l)))
    if tL >= L:
        tL = L
    # Make sure there are at least 2 grid steps when possible so the 2
    # TensorCores on v7x both get work (no effect on v5e/v6e).
    if (pl.cdiv(B, tB) * pl.cdiv(L, tL)) < 2 and L >= 256:
        tL = max(128, (((L + 1) // 2) // 128) * 128)
    return tB, tL


@functools.partial(
    jax.jit, static_argnames=("vmem_block_budget_bytes", "max_block_l")
)
def _linear_pooling_3d(
    x, w, *, vmem_block_budget_bytes=8 * 1024 * 1024, max_block_l=8192
):
    """x: (B, C, L), w: (1, C) -> (B, L). out[b, l] = sum_c w[0, c] * x[b, c, l]."""
    B, C, L = x.shape
    tB, tL = _choose_tiles(
        B, C, L, x.dtype.itemsize, vmem_block_budget_bytes, max_block_l
    )
    grid = (pl.cdiv(B, tB), pl.cdiv(L, tL))
    return pl.pallas_call(
        _linear_pool_kernel,
        out_shape=jax.ShapeDtypeStruct((B, L), x.dtype),
        grid=grid,
        in_specs=[
            # Full channel extent per block; B and L tiled.
            pl.BlockSpec((tB, C, tL), lambda bi, li: (bi, 0, li)),
            # Tiny weight vector lives in SMEM; read as scalars in the kernel.
            pl.BlockSpec(memory_space=pltpu.MemorySpace.SMEM),
        ],
        out_specs=pl.BlockSpec((tB, tL), lambda bi, li: (bi, li)),
        compiler_params=pltpu.CompilerParams(
            dimension_semantics=("parallel", "parallel"),
            vmem_limit_bytes=32 * 1024 * 1024,
        ),
    )(x, w.astype(jnp.float32))


def linear_pooling(x, w):
    """LinearPooling forward. x: (..., C, L), w: (1, C) -> (..., L)."""
    *lead, C, L = x.shape
    B = 1
    for d in lead:
        B *= d
    x3 = x.reshape(B, C, L)
    out = _linear_pooling_3d(x3, w)
    return out.reshape(*lead, L)


def make_linear_pooling_params(num_channels, key):
    """Deterministic synthetic params matching nn.Linear(num_channels, 1, bias=False)."""
    if num_channels == 1:
        # nn.Identity() branch: equivalent to a fixed weight of 1.0 on the single channel.
        return jnp.ones((1, 1), dtype=jnp.float32)
    bound = 1.0 / jnp.sqrt(jnp.float32(num_channels))
    return jax.random.uniform(
        key, (1, num_channels), dtype=jnp.float32, minval=-bound, maxval=bound
    )


if __name__ == "__main__":
    key = jax.random.PRNGKey(0)
    k_x, k_w = jax.random.split(key)

    B, C, L = 2, 8, 256  # batch, num_channels, sequence length
    x = jax.random.normal(k_x, (B, C, L), dtype=jnp.float32)
    w = make_linear_pooling_params(C, k_w)

    out = linear_pooling(x, w)
    out = jax.block_until_ready(out)

    # Pure-JAX reference of the PyTorch forward.
    ref = jnp.einsum("c,bcl->bl", w[0], x)
    assert out.shape == (B, L)
    assert jnp.allclose(out, ref, atol=1e-5, rtol=1e-5)

    print("KERNEL_OK")
</pallas_src>

<mosaic_0001>
module attributes {stable_mosaic.version = 11 : i64} {
  func.func @_linear_pool_kernel(%arg0: i32, %arg1: i32, %arg2: memref<2x8x128xf32, #tpu.memory_space<vmem>>, %arg3: memref<1x8xf32, #tpu.memory_space<smem>>, %arg4: memref<2x128xf32, #tpu.memory_space<vmem>>) attributes {dimension_semantics = [#tpu.dimension_semantics<parallel>, #tpu.dimension_semantics<parallel>], iteration_bounds = array<i64: 1, 2>, scalar_prefetch = 0 : i64, scratch_operands = 0 : i64, tpu.core_type = #tpu.core_type<tc>, window_params = [{transform_indices = @transform_0, window_bounds = array<i64: 2, 8, 128>}, {transform_indices = @transform_1, window_bounds = array<i64: 1, 8>}, {transform_indices = @transform_2, window_bounds = array<i64: 2, 128>}]} {
    %c0 = arith.constant 0 : index
    %c0_0 = arith.constant 0 : index
    %c0_1 = arith.constant 0 : index
    %0 = vector.load %arg2[%c0, %c0_0, %c0_1] : memref<2x8x128xf32, #tpu.memory_space<vmem>>, vector<2x1x128xf32>
    %1 = vector.shape_cast %0 : vector<2x1x128xf32> to vector<2x128xf32>
    %c0_2 = arith.constant 0 : index
    %c0_3 = arith.constant 0 : index
    %2 = memref.load %arg3[%c0_2, %c0_3] : memref<1x8xf32, #tpu.memory_space<smem>>
    %3 = vector.broadcast %2 : f32 to vector<2x128xf32>
    %4 = arith.mulf %1, %3 : vector<2x128xf32>
    %c0_4 = arith.constant 0 : index
    %c1 = arith.constant 1 : index
    %c0_5 = arith.constant 0 : index
    %5 = vector.load %arg2[%c0_4, %c1, %c0_5] : memref<2x8x128xf32, #tpu.memory_space<vmem>>, vector<2x1x128xf32>
    %6 = vector.shape_cast %5 : vector<2x1x128xf32> to vector<2x128xf32>
    %c0_6 = arith.constant 0 : index
    %c1_7 = arith.constant 1 : index
    %7 = memref.load %arg3[%c0_6, %c1_7] : memref<1x8xf32, #tpu.memory_space<smem>>
    %8 = vector.broadcast %7 : f32 to vector<2x128xf32>
    %9 = arith.mulf %6, %8 : vector<2x128xf32>
    %10 = arith.addf %4, %9 : vector<2x128xf32>
    %c0_8 = arith.constant 0 : index
    %c2 = arith.constant 2 : index
    %c0_9 = arith.constant 0 : index
    %11 = vector.load %arg2[%c0_8, %c2, %c0_9] : memref<2x8x128xf32, #tpu.memory_space<vmem>>, vector<2x1x128xf32>
    %12 = vector.shape_cast %11 : vector<2x1x128xf32> to vector<2x128xf32>
    %c0_10 = arith.constant 0 : index
    %c2_11 = arith.constant 2 : index
    %13 = memref.load %arg3[%c0_10, %c2_11] : memref<1x8xf32, #tpu.memory_space<smem>>
    %14 = vector.broadcast %13 : f32 to vector<2x128xf32>
    %15 = arith.mulf %12, %14 : vector<2x128xf32>
    %16 = arith.addf %10, %15 : vector<2x128xf32>
    %c0_12 = arith.constant 0 : index
    %c3 = arith.constant 3 : index
    %c0_13 = arith.constant 0 : index
    %17 = vector.load %arg2[%c0_12, %c3, %c0_13] : memref<2x8x128xf32, #tpu.memory_space<vmem>>, vector<2x1x128xf32>
    %18 = vector.shape_cast %17 : vector<2x1x128xf32> to vector<2x128xf32>
    %c0_14 = arith.constant 0 : index
    %c3_15 = arith.constant 3 : index
    %19 = memref.load %arg3[%c0_14, %c3_15] : memref<1x8xf32, #tpu.memory_space<smem>>
    %20 = vector.broadcast %19 : f32 to vector<2x128xf32>
    %21 = arith.mulf %18, %20 : vector<2x128xf32>
    %22 = arith.addf %16, %21 : vector<2x128xf32>
    %c0_16 = arith.constant 0 : index
    %c4 = arith.constant 4 : index
    %c0_17 = arith.constant 0 : index
    %23 = vector.load %arg2[%c0_16, %c4, %c0_17] : memref<2x8x128xf32, #tpu.memory_space<vmem>>, vector<2x1x128xf32>
    %24 = vector.shape_cast %23 : vector<2x1x128xf32> to vector<2x128xf32>
    %c0_18 = arith.constant 0 : index
    %c4_19 = arith.constant 4 : index
    %25 = memref.load %arg3[%c0_18, %c4_19] : memref<1x8xf32, #tpu.memory_space<smem>>
    %26 = vector.broadcast %25 : f32 to vector<2x128xf32>
    %27 = arith.mulf %24, %26 : vector<2x128xf32>
    %28 = arith.addf %22, %27 : vector<2x128xf32>
    %c0_20 = arith.constant 0 : index
    %c5 = arith.constant 5 : index
    %c0_21 = arith.constant 0 : index
    %29 = vector.load %arg2[%c0_20, %c5, %c0_21] : memref<2x8x128xf32, #tpu.memory_space<vmem>>, vector<2x1x128xf32>
    %30 = vector.shape_cast %29 : vector<2x1x128xf32> to vector<2x128xf32>
    %c0_22 = arith.constant 0 : index
    %c5_23 = arith.constant 5 : index
    %31 = memref.load %arg3[%c0_22, %c5_23] : memref<1x8xf32, #tpu.memory_space<smem>>
    %32 = vector.broadcast %31 : f32 to vector<2x128xf32>
    %33 = arith.mulf %30, %32 : vector<2x128xf32>
    %34 = arith.addf %28, %33 : vector<2x128xf32>
    %c0_24 = arith.constant 0 : index
    %c6 = arith.constant 6 : index
    %c0_25 = arith.constant 0 : index
    %35 = vector.load %arg2[%c0_24, %c6, %c0_25] : memref<2x8x128xf32, #tpu.memory_space<vmem>>, vector<2x1x128xf32>
    %36 = vector.shape_cast %35 : vector<2x1x128xf32> to vector<2x128xf32>
    %c0_26 = arith.constant 0 : index
    %c6_27 = arith.constant 6 : index
    %37 = memref.load %arg3[%c0_26, %c6_27] : memref<1x8xf32, #tpu.memory_space<smem>>
    %38 = vector.broadcast %37 : f32 to vector<2x128xf32>
    %39 = arith.mulf %36, %38 : vector<2x128xf32>
    %40 = arith.addf %34, %39 : vector<2x128xf32>
    %c0_28 = arith.constant 0 : index
    %c7 = arith.constant 7 : index
    %c0_29 = arith.constant 0 : index
    %41 = vector.load %arg2[%c0_28, %c7, %c0_29] : memref<2x8x128xf32, #tpu.memory_space<vmem>>, vector<2x1x128xf32>
    %42 = vector.shape_cast %41 : vector<2x1x128xf32> to vector<2x128xf32>
    %c0_30 = arith.constant 0 : index
    %c7_31 = arith.constant 7 : index
    %43 = memref.load %arg3[%c0_30, %c7_31] : memref<1x8xf32, #tpu.memory_space<smem>>
    %44 = vector.broadcast %43 : f32 to vector<2x128xf32>
    %45 = arith.mulf %42, %44 : vector<2x128xf32>
    %46 = arith.addf %40, %45 : vector<2x128xf32>
    %c0_32 = arith.constant 0 : index
    %c0_33 = arith.constant 0 : index
    %47 = vector.load %arg4[%c0_32, %c0_33] : memref<2x128xf32, #tpu.memory_space<vmem>>, vector<2x128xf32>
    tpu.vector_store %arg4[%c0_32, %c0_33], %46 {strides = array<i32>} : memref<2x128xf32, #tpu.memory_space<vmem>>, vector<2x128xf32>,
    return
  }
  func.func @transform_0(%arg0: i32, %arg1: i32) -> (i32, i32, i32) {
    %c0_i32 = arith.constant 0 : i32
    %c0_i32_0 = arith.constant 0 : i32
    return %arg0, %c0_i32, %arg1 : i32, i32, i32
  }
  func.func @transform_1(%arg0: i32, %arg1: i32) -> (i32, i32) {
    %c0_i32 = arith.constant 0 : i32
    %c0_i32_0 = arith.constant 0 : i32
    %c0_i32_1 = arith.constant 0 : i32
    return %c0_i32, %c0_i32_0 : i32, i32
  }
  func.func @transform_2(%arg0: i32, %arg1: i32) -> (i32, i32) {
    %c0_i32 = arith.constant 0 : i32
    return %arg0, %arg1 : i32, i32
  }
}

</mosaic_0001>

<bundles_post_ra>
// kernel: _linear_pooling_3d.1
= control target key start
LH: loop header
LB: loop body
LE: loop exit
PB: predicated region body
PF: predicated region fallthrough
CT: control target
= control target key end

     0   :  { %s810_s0 = inlined_call_operand.hbm [shape: f32[2,8,256], index: 0, kind: input, shape index: {}]   ;;  %s811_s1 = inlined_call_operand.hbm [shape: f32[1,8], index: 1, kind: input, shape index: {}]   ;;  %s812_s2 = inlined_call_operand.hbm [shape: f32[2,256], index: 2, kind: output, shape index: {}]  }
   0x1   :  { %813 = sst [smem:[#allocation11_spill]] %s811_s1 }
   0x2   :  { %7 = vsyncpa [#allocation3], 0 }
   0x3   :  { %9 = vsyncpa [#allocation3 + $0x1], 0 }
   0x4   :  { %10 = vsyncpa [#allocation5], 0 }
   0x5   :  { %11 = vsyncpa [#allocation4], 0 }
   0x6   :  { %13 = vsyncpa [#allocation4 + $0x1], 0  ;;  %s628_s9 = smov 0   ;;  %s630_s10 = smov 0  }
   0x7   :  { %s632_s11 = smov 0   ;;  %s634_s12 = smov 0  }
   0x8   :  { %s636_s13 = smov 0   ;;  %s638_s14 = smov 0  }
   0x9 LB: > { %s378_s15 = sadd.s32 4294967295, %s607_s14   ;;  %s379_s16 = sadd.s32 4294967294, %s607_s14   ;;  %s607_s14 = sphi %s638_s14, %s19_s14   ;;  %s603_s13 = sphi %s636_s13, %s826_s13   ;;  %s599_s12 = sphi %s634_s12, %s825_s12   ;;  %s595_s11 = sphi %s632_s11, %s824_s11   ;;  %s591_s10 = sphi %s630_s10, %s823_s10   ;;  %s587_s9 = sphi %s628_s9, %s822_s9  }
   0xa   : > { %s40_s17 = sadd.s32 1, %s595_s11  ;;  %p47_p0 = scmp.ne.s32.totalorder %s595_s11, %s591_s10 }
   0xb   : > { %p48_p1 = scmp.eq.s32.totalorder %s607_s14, 0  ;;  %p53_p2 = scmp.ne.s32.totalorder %s591_s10, %s587_s9 }
   0xc   : > { %p666_p3 = scmp.eq.s32.totalorder %s378_s15, 0  ;;  %p100_p4 = scmp.eq.s32.totalorder %s378_s15, 1 }
   0xd   : > { %p670_p5 = por %p48_p1, %p47_p0  ;;  %p106_p6 = scmp.eq.s32.totalorder %s379_s16, 1 }
   0xe   : > { %p676_p7 = por %p666_p3, %p53_p2  ;;  %p680_p8 = por %p100_p4, %p47_p0 }
   0xf   : > { %p684_p9 = por %p106_p6, %p53_p2  ;;  %p380_p10 = scmp.ge.s32.totalorder %s607_s14, 1 }
  0x10   : > { %p113_p11 = scmp.lt.s32.totalorder %s607_s14, 3  ;;  %s819_s1 = sld [smem:[#allocation11_spill]] }
  0x11   : > { %p382_p13 = scmp.ge.s32.totalorder %s607_s14, 2  ;;  %p421_p0 = scmp.lt.s32.totalorder %s607_s14, 2 }
  0x12   : > { %p693_p12 = pnand %p380_p10, %p113_p11  ;;  %s28_s28 = sadd.s32 1, %s603_s13 }
  0x13   : > { %p703_p2 = pnand %p421_p0, %p670_p5  ;;  %p29_p6 = scmp.ge.s32.totalorder %s28_s28, 2 }
  0x14   : > { %p408_p1 = pneg %p693_p12  ;;  %s136_s29 = sand.u32 1, %s595_s11  }
  0x15   : > { %s609_s30 = smov [#allocation6]   ;;  %s828_s28 = smov (%p29_p6, %s28_s28), 0 }
  0x16   : > { %s125_s25 = sshll.u32 %s819_s1, 4  ;;  %p409_p4 = pnand %p408_p1, %p666_p3  ;;  %s126_s25 = int_to_ptr.hbm [resolvable:$true] %s125_s25 }
  0x17   : > { %s383_s3 = sshll.u32 %s136_s29, 4  ;;  %s36_s4 = ssub.s32 %s603_s13, %s828_s28 }
  0x18   : > { %411 = dma.hbm_to_smem (!%p409_p4), %s126_s25, 16, %s609_s30, [#allocation5]  }
  0x19   : > { %p38_p10 = scmp.eq.s32.totalorder %s36_s4, 0  ;;  %s384_s5 = sshll.u32 %s603_s13, 3 }
  0x1a   : > { %s147_s8 = scalar_lea.hbm %s810_s0, %s384_s5  ;;  %s140_s15 = scalar_lea.vmem [#allocation2], %s383_s3 }
  0x1b   : > { %s150_s16 = sshll.u32 %s140_s15, 4  ;;  %s148_s23 = sshll.u32 %s147_s8, 4  ;;  %s151_s16 = int_to_ptr.vmem [resolvable:$true] %s150_s16  ;;  %s149_s23 = int_to_ptr.hbm [resolvable:$true] %s148_s23 }
  0x1c   : > { %s722_s19 = scalar_select %p38_p10, %s595_s11, %s40_s17  }
  0x1d   : > { %s137_s24 = scalar_lea.sflag [#allocation3], %s136_s29  ;;  %s610_s25 = smov 256  }
  0x1e   : > { %s611_s30 = smov 128   ;;  %s612_s1 = smov 8  }
  0x1f   : > { %415 = dma.hbm_to_vmem [thread:$0]  (!%p703_p2), %s149_s23, 256, %s151_s16, %s137_s24, %s610_s25, %s611_s30, %s612_s1  }
  0x20   : > { %162 = sbr.rel (%p693_p12) target bundleno = 72 (0x48), region = 28  ;;  %s729_s4 = sand.u32 (!%p693_p12), 1, %s591_s10  }
  0x21   : > { %s386_s17 = sshll.u32 (!%p693_p12), %s729_s4, 4  ;;  %s165_s3 = scalar_lea.sflag (!%p693_p12), [#allocation3], %s729_s4 }
  0x22   : > { %s733_s5 = scalar_lea.vmem (!%p693_p12), [#allocation2], %s386_s17 }
  0x25   : > { %574 = dma.done.wait (%p676_p7), %s165_s3, 256  }
  0x26   : > { %576 = vsyncadd (%p676_p7), %s165_s3, 4294967040 }
  0x27   : > { %578 = dma.done.wait (%p666_p3), [#allocation5], 16  }
  0x28   : > { %580 = vsyncadd (%p666_p3), [#allocation5], 4294967280 }
  0x29   : > { %179 = sfence }
  0x2a   : > { %s199_s1 = sld [smem:[#allocation6]]  ;;  %v197_v0 = vld [vmem:[%s733_s5] sm:$0x1]  ;;  %v198_v1 = vld [vmem:[%s733_s5 + $0x8] sm:$0x1]  ;;  %s388_s8 = sshll.u32 %s729_s4, 1 }
  0x2b   : > { %s389_s26 = sld [smem:[#allocation6 + $0x1]]  ;;  %v203_v2 = vld [vmem:[%s733_s5 + $0x1] sm:$0x1]  ;;  %v204_v3 = vld [vmem:[%s733_s5 + $0x9] sm:$0x1]  ;;  %s397_s15 = sshll.u32 %s599_s12, 1 }
  0x2c   : > { %s390_s27 = sld [smem:[#allocation6 + $0x2]]  ;;  %v211_v5 = vld [vmem:[%s733_s5 + $0x2] sm:$0x1]  ;;  %v212_v6 = vld [vmem:[%s733_s5 + $0xa] sm:$0x1]  ;;  %s279_s24 = scalar_lea.hbm %s812_s2, %s397_s15  ;;  %vm262_vm0 = vcmask 1041409  }
  0x2d   : > { %s391_s20 = sld [smem:[#allocation6 + $0x3]]  ;;  %v219_v10 = vld [vmem:[%s733_s5 + $0x3] sm:$0x1]  ;;  %v220_v11 = vld [vmem:[%s733_s5 + $0xb] sm:$0x1]  ;;  %s195_s25 = scalar_lea.vmem [#allocation7], %s388_s8 }
  0x2e   : > { %s745_s29 = sld [smem:[#allocation6 + $0x4]]  ;;  %v227_v18 = vld [vmem:[%s733_s5 + $0x4] sm:$0x1]  ;;  %v228_v19 = vld [vmem:[%s733_s5 + $0xc] sm:$0x1]  ;;  %s281_s30 = sshll.u32 %s195_s25, 4  ;;  %s282_s30 = int_to_ptr.vmem [resolvable:$true] %s281_s30 }
  0x2f   : > { %s749_s18 = sld [smem:[#allocation6 + $0x5]]  ;;  %v235_v25 = vld [vmem:[%s733_s5 + $0x5] sm:$0x1]  ;;  %v236_v26 = vld [vmem:[%s733_s5 + $0xd] sm:$0x1]  ;;  %s283_s17 = sshll.u32 %s279_s24, 4  ;;  %s284_s17 = int_to_ptr.hbm [resolvable:$true] %s283_s17 }
  0x30   : > { %v200_v4 = vstv %s199_s1  ;;  %s753_s6 = sld [smem:[#allocation6 + $0x6]]  ;;  %v243_v32 = vld [vmem:[%s733_s5 + $0x6] sm:$0x1]  ;;  %v244_v33 = vld [vmem:[%s733_s5 + $0xe] sm:$0x1]  ;;  %s267_s12 = scalar_lea.sflag [#allocation4], %s729_s4 }
  0x31   : > { %v201_v7 = vmul.f32 %v200_v4, %v197_v0  ;;  %v202_v8 = vmul.f32 %v200_v4, %v198_v1  ;;  %v206_v9 = vstv %s389_s26  ;;  %s757_s7 = sld [smem:[#allocation6 + $0x7]]  ;;  %v251_v39 = vld [vmem:[%s733_s5 + $0x7] sm:$0x1]  ;;  %v252_v40 = vld [vmem:[%s733_s5 + $0xf] sm:$0x1]  ;;  %s535_s3 = sshra.s32 %s284_s17, 4  ;;  %s536_s3 = int_to_ptr.hbm [resolvable:$true] %s535_s3 }
  0x32   : > { %v207_v12 = vmul.f32 %v206_v9, %v203_v2  ;;  %v208_v13 = vmul.f32 %v206_v9, %v204_v3  ;;  %v214_v14 = vstv %s390_s27  ;;  %s537_s5 = scalar_lea.hbm %s536_s3, 2  ;;  %s541_s27 = scalar_lea.hbm %s812_s2, 4 }
  0x33   : > { %v215_v15 = vmul.f32 %v214_v14, %v211_v5  ;;  %v216_v16 = vmul.f32 %v214_v14, %v212_v6  ;;  %v222_v17 = vstv %s391_s20  ;;  %p538_p3 = scmp.ne.s32.totalorder %s536_s3, %s537_s5  ;;  %p542_p11 = scmp.lt.s32.totalorder %s536_s3, %s812_s2 }
  0x34   : > { %v209_v20 = vadd.f32 %v207_v12, %v201_v7  ;;  %v210_v21 = vadd.f32 %v208_v13, %v202_v8  ;;  %v223_v22 = vmul.f32 %v222_v17, %v219_v10  ;;  %v224_v23 = vmul.f32 %v222_v17, %v220_v11  ;;  %p543_p12 = scmp.lt.s32.totalorder %s541_s27, %s537_s5 }
  0x35   : > { %v230_v24 = vstv %s745_s29  ;;  %v238_v27 = vstv %s749_s18  ;;  %p539_p5 = pnand %p538_p3, %p680_p8 }
  0x36   : > { %v217_v28 = vadd.f32 %v215_v15, %v209_v20  ;;  %v218_v29 = vadd.f32 %v216_v16, %v210_v21  ;;  %v231_v30 = vmul.f32 %v230_v24, %v227_v18  ;;  %v232_v31 = vmul.f32 %v230_v24, %v228_v19  ;;  %p544_p0 = por %p543_p12, %p542_p11 }
  0x37   : > { %v246_v34 = vstv %s753_s6  ;;  %v239_v37 = vmul.f32 %v238_v27, %v235_v25  ;;  %v240_v38 = vmul.f32 %v238_v27, %v236_v26  ;;  %v254_v41 = vstv %s757_s7  ;;  %p540_p7 = pneg %p539_p5 }
  0x38   : > { %v225_v35 = vadd.f32 %v223_v22, %v217_v28  ;;  %v226_v36 = vadd.f32 %v224_v23, %v218_v29  ;;  %v247_v44 = vmul.f32 %v246_v34, %v243_v32  ;;  %v248_v45 = vmul.f32 %v246_v34, %v244_v33 }
  0x39   : > { %v255_v48 = vmul.f32 %v254_v41, %v251_v39  ;;  %v256_v49 = vmul.f32 %v254_v41, %v252_v40  ;;  %p545_p1 = pnand %p544_p0, %p540_p7 }
  0x3a   : > { %v233_v42 = vadd.f32 %v231_v30, %v225_v35  ;;  %v234_v43 = vadd.f32 %v232_v31, %v226_v36 }
  0x3c   : > { %v241_v46 = vadd.f32 %v239_v37, %v233_v42  ;;  %v242_v47 = vadd.f32 %v240_v38, %v234_v43 }
  0x3e   : > { %v249_v50 = vadd.f32 %v247_v44, %v241_v46  ;;  %v250_v51 = vadd.f32 %v248_v45, %v242_v47 }
  0x40   : > { %v257_v52 = vadd.f32 %v255_v48, %v249_v50  ;;  %v258_v53 = vadd.f32 %v256_v49, %v250_v51 }
  0x42   : > { %v261_v54 = vrot.slane %v258_v53, 7 }
  0x44   : > { %v263_v55 = vsel %vm262_vm0, %v261_v54, %v257_v52 }
  0x45   : > { %265 = vst [vmem:[%s195_s25] sm:$0x3] %v263_v55 }
  0x46   : > { %548 = shalt.err (!%p545_p1)
}
  0x47   : > { %406 = dma.vmem_to_hbm [thread:$0]  (%p680_p8), %s282_s30, 32, %s284_s17, %s267_s12  }
  0x48 PF: > { %s295_s4 = sand.u32 1, %s587_s9   ;;  %p417_p2 = pnand %p382_p13, %p684_p9 }
  0x49   : > { %s296_s18 = scalar_lea.sflag [#allocation4], %s295_s4 }
  0x4a   : > { %p418_p4 = pneg %p417_p2 }
  0x4c   : > { %582 = dma.done.wait (%p418_p4), %s296_s18, 32  }
  0x4d   : > { %584 = vsyncadd (%p418_p4), %s296_s18, 4294967264  ;;  %s19_s14 = sadd.s32 1, %s607_s14   ;;  %s822_s9 = smov %s591_s10 }
  0x4e   : > { %p16_p6 = scmp.ge.s32.totalorder %s19_s14, 4   ;;  %s823_s10 = smov %s595_s11 }
  0x4f   : > { %s824_s11 = smov %s722_s19  ;;  %s825_s12 = smov %s603_s13 }
  0x50   : > { %s826_s13 = smov %s828_s28  ;;  %18 = sbr.rel (!%p16_p6) target bundleno = 9 (0x9), region = 78 }
  0x55   :  { %302 = vsyncpa [#allocation3], 1 }
  0x56   :  { %304 = vsyncpa [#allocation3 + $0x1], 1 }
  0x57   :  { %305 = vsyncpa [#allocation4], 1 }
  0x58   :  { %307 = vsyncpa [#allocation4 + $0x1], 1 }
  0x59   :  { %308 = vsyncpa [#allocation5], 1 }
  0x5a   :  { %310 = vsyncpa [#allocation5 + $0x1], 1 }

</bundles_post_ra>
